<compile_context>
chip_gen: v5e
topology: v5e:2x2
jax: 0.10.0
libtpu: 0.0.40
codegen_flags: <defaults>
</compile_context>

<pallas_src>
import jax
import jax.numpy as jnp
from jax.experimental import pallas as pl
from jax.experimental.pallas import tpu as pltpu

_VMEM_LIMIT = 32 * 1024 * 1024   # explicit budget: safe on v5e/v6e (128 MiB) and v7x (64 MiB)


# ----------------------------- Pallas kernels ------------------------------ #

def _conv1x1_bn_relu_kernel(x_ref, w_ref, b_ref, o_ref):
    """o = relu(W @ x + b); channels on sublanes, pixels on lanes (lane-dense)."""
    y = jnp.dot(w_ref[...], x_ref[...], preferred_element_type=jnp.float32)
    o_ref[...] = jnp.maximum(y + b_ref[...], 0.0).astype(o_ref.dtype)


def _fused_up_kernel(cols_ref, x_ref, w2_ref, b2_ref, w3_ref, wd_ref, b34_ref,
                     o_ref):
    """One output parity of the upsampling tail, fully fused:

        y2  = relu(W2p @ cols + b2)            # ConvT(4x4,s2) sub-pixel conv + bn2
        out = relu(W3 @ y2 + Wdp @ x + b34)    # conv3+bn3 + downsample+bn_d + add
    """
    y2 = jnp.dot(w2_ref[0], cols_ref[0], preferred_element_type=jnp.float32)
    y2 = jnp.maximum(y2 + b2_ref[...], 0.0).astype(jnp.bfloat16)
    y3 = jnp.dot(w3_ref[...], y2, preferred_element_type=jnp.float32)
    idn = jnp.dot(wd_ref[0], x_ref[...], preferred_element_type=jnp.float32)
    o_ref[0] = jnp.maximum(y3 + idn + b34_ref[...], 0.0).astype(o_ref.dtype)


# ------------------------------ host-side prep ----------------------------- #

def bn_fold(gamma, beta, mean, var, eps=1e-5):
    scale = gamma / jnp.sqrt(var + eps)
    shift = beta - mean * scale
    return scale, shift


def _pick_tile(mp):
    """Largest pixel tile (multiple of 128) that still gives >= 2 grid steps."""
    for tn in (1024, 512, 256, 128):
        if mp % tn == 0 and mp // tn >= 2:
            return tn
    return 128


def _convT4_subweights(w, scale):
    """ConvTranspose2d(k=4, s=2, p=1) weight (Cin, Cout, 4, 4) -> four sub-pixel
    stride-1 2x2 conv weights, shape (4, Cout, 4*Cin), with bn scale folded in.
    Parity order p = 2*py + px; tap order (dy, dx) row-major over {0,1}^2."""
    subs = []
    for py in (0, 1):
        for px in (0, 1):
            taps = [w[:, :, 3 - py - 2 * dy, 3 - px - 2 * dx]
                    for dy in (0, 1) for dx in (0, 1)]        # each (Cin, Cout)
            wsub = jnp.concatenate(taps, axis=0).T            # (Cout, 4*Cin)
            subs.append(scale[:, None] * wsub)
    return jnp.stack(subs, axis=0)


def _convT2_subweights(w, scale):
    """ConvTranspose2d(k=2, s=2) weight (Cin, Cout, 2, 2) -> per-parity 1x1 conv
    weights, shape (4, Cout, Cin), with bn scale folded in."""
    return jnp.stack([scale[:, None] * w[:, :, py, px].T
                      for py in (0, 1) for px in (0, 1)], axis=0)


def _subpixel_cols(h_cnhw):
    """Per-parity 2x2-window im2col of (C, N, H, W) -> (4, 4*C, N*H*W).
    Tap order matches _convT4_subweights."""
    C, N, H, W = h_cnhw.shape
    hp = jnp.pad(h_cnhw, ((0, 0), (0, 0), (1, 1), (1, 1)))
    cols = []
    for py in (0, 1):
        for px in (0, 1):
            taps = [hp[:, :, py + dy:py + dy + H, px + dx:px + dx + W]
                    for dy in (0, 1) for dx in (0, 1)]
            cols.append(jnp.concatenate(taps, axis=0).reshape(4 * C, N * H * W))
    return jnp.stack(cols, axis=0)


# --------------------------------- forward --------------------------------- #

def bottleneck_forward(x_nchw, params):
    """Bottleneck(inplanes=C, planes=P, stride=2) forward (NCHW in / NCHW out)."""
    f32, bf16 = jnp.float32, jnp.bfloat16
    N, C, H, W = x_nchw.shape
    P = params['W3'].shape[0]
    M = N * H * W
    Mp = pl.cdiv(M, 128) * 128
    tn = _pick_tile(Mp)

    # Fold BN into (scaled weight rows, shift).
    s1, b1 = bn_fold(*params['bn1'])
    s2, b2 = bn_fold(*params['bn2'])
    s3, b3 = bn_fold(*params['bn3'])
    sd, bd = bn_fold(*params['bnd'])

    W1c = (s1[:, None] * params['W1']).astype(bf16)            # (C, C)
    W2s = _convT4_subweights(params['W2'], s2).astype(bf16)    # (4, C, 4C)
    W3c = (s3[:, None] * params['W3']).astype(bf16)            # (P, C)
    Wds = _convT2_subweights(params['Wd'], sd).astype(bf16)    # (4, P, C)
    b1c = b1.reshape(C, 1).astype(f32)
    b2c = b2.reshape(C, 1).astype(f32)
    b34 = (b3 + bd).reshape(P, 1).astype(f32)

    # channels-on-sublanes / pixels-on-lanes slab, pixel axis padded to 128k.
    x_t = jnp.transpose(x_nchw, (1, 0, 2, 3)).reshape(C, M)
    x_tp = jnp.pad(x_t, ((0, 0), (0, Mp - M))).astype(bf16)    # (C, Mp)

    # conv1 (1x1) + bn1 + relu
    h1 = pl.pallas_call(
        _conv1x1_bn_relu_kernel,
        out_shape=jax.ShapeDtypeStruct((C, Mp), bf16),
        grid=(Mp // tn,),
        in_specs=[pl.BlockSpec((C, tn), lambda i: (0, i)),
                  pl.BlockSpec((C, C), lambda i: (0, 0)),
                  pl.BlockSpec((C, 1), lambda i: (0, 0))],
        out_specs=pl.BlockSpec((C, tn), lambda i: (0, i)),
        compiler_params=pltpu.CompilerParams(
            dimension_semantics=("parallel",),
            vmem_limit_bytes=_VMEM_LIMIT),
    )(x_tp, W1c, b1c)

    # sub-pixel im2col for ConvT(4x4, s=2, p=1): 4 parities x (4C, pixels)
    cols = _subpixel_cols(h1[:, :M].reshape(C, N, H, W))
    cols = jnp.pad(cols, ((0, 0), (0, 0), (0, Mp - M)))        # (4, 4C, Mp) bf16

    # fused: conv2+bn2+relu -> conv3+bn3, downsample+bn_d, residual add, relu
    out4 = pl.pallas_call(
        _fused_up_kernel,
        out_shape=jax.ShapeDtypeStruct((4, P, Mp), f32),
        grid=(4, Mp // tn),
        in_specs=[
            pl.BlockSpec((1, 4 * C, tn), lambda p, i: (p, 0, i)),   # cols
            pl.BlockSpec((C, tn),        lambda p, i: (0, i)),      # x (downsample)
            pl.BlockSpec((1, C, 4 * C),  lambda p, i: (p, 0, 0)),   # W2 sub-kernel
            pl.BlockSpec((C, 1),         lambda p, i: (0, 0)),      # b2
            pl.BlockSpec((P, C),         lambda p, i: (0, 0)),      # W3
            pl.BlockSpec((1, P, C),      lambda p, i: (p, 0, 0)),   # Wd sub-kernel
            pl.BlockSpec((P, 1),         lambda p, i: (0, 0)),      # b3 + bd
        ],
        out_specs=pl.BlockSpec((1, P, tn), lambda p, i: (p, 0, i)),
        compiler_params=pltpu.CompilerParams(
            dimension_semantics=("parallel", "parallel"),
            vmem_limit_bytes=_VMEM_LIMIT),
    )(cols, x_tp, W2s, b2c, W3c, Wds, b34)

    # pixel-shuffle the 4 parity slabs back to (N, P, 2H, 2W)
    out4 = out4[:, :, :M].reshape(2, 2, P, N, H, W)
    return jnp.transpose(out4, (3, 2, 4, 0, 5, 1)).reshape(N, P, 2 * H, 2 * W)


# ----------------------------- pure-JAX reference --------------------------- #

def _convT_ref(x_nchw, w, stride, padding):
    k = w.shape[2]
    w_flip = w[:, :, ::-1, ::-1]
    w_oihw = jnp.transpose(w_flip, (1, 0, 2, 3))
    p = k - 1 - padding
    return jax.lax.conv_general_dilated(
        x_nchw, w_oihw, window_strides=(1, 1),
        padding=[(p, p), (p, p)], lhs_dilation=(stride, stride),
        dimension_numbers=('NCHW', 'OIHW', 'NCHW'))


def ref_forward(x, params):
    def bn(y, prms):
        s, b = bn_fold(*prms)
        return y * s[None, :, None, None] + b[None, :, None, None]

    out = jnp.einsum('nchw,oc->nohw', x, params['W1'])
    out = jnp.maximum(bn(out, params['bn1']), 0.0)
    out = _convT_ref(out, params['W2'], 2, 1)
    out = jnp.maximum(bn(out, params['bn2']), 0.0)
    out = jnp.einsum('nchw,oc->nohw', out, params['W3'])
    out = bn(out, params['bn3'])
    idn = bn(_convT_ref(x, params['Wd'], 2, 0), params['bnd'])
    return jnp.maximum(out + idn, 0.0)


# ----------------------------------- main ----------------------------------- #

if __name__ == "__main__":
    # Bottleneck(inplanes=8, planes=16, stride=2)  (stride must be != 1, else the
    # original __init__ references the missing self.inplanes attribute)
    N, C, P, H, W = 2, 8, 16, 16, 16
    f32 = jnp.float32
    key = jax.random.PRNGKey(0)
    ks = jax.random.split(key, 21)

    x = jax.random.normal(ks[0], (N, C, H, W), f32)

    def bn_params(kg, kb, km, kv, ch):
        gamma = 1.0 + 0.1 * jax.random.normal(kg, (ch,), f32)
        beta = 0.1 * jax.random.normal(kb, (ch,), f32)
        mean = 0.1 * jax.random.normal(km, (ch,), f32)
        var = 0.5 + jnp.abs(jax.random.normal(kv, (ch,), f32)) * 0.1
        return (gamma, beta, mean, var)

    params = {
        'W1': 0.2 * jax.random.normal(ks[1], (C, C), f32),        # conv1 (out, in)
        'W2': 0.1 * jax.random.normal(ks[2], (C, C, 4, 4), f32),  # convT (Cin,Cout,4,4)
        'W3': 0.2 * jax.random.normal(ks[3], (P, C), f32),        # conv3 (out, in)
        'Wd': 0.2 * jax.random.normal(ks[4], (C, P, 2, 2), f32),  # downsample convT
        'bn1': bn_params(ks[5], ks[6], ks[7], ks[8], C),
        'bn2': bn_params(ks[9], ks[10], ks[11], ks[12], C),
        'bn3': bn_params(ks[13], ks[14], ks[15], ks[16], P),
        'bnd': bn_params(ks[17], ks[18], ks[19], ks[20], P),
    }

    fwd = jax.jit(bottleneck_forward)
    out = jax.block_until_ready(fwd(x, params))
    assert out.shape == (N, P, 2 * H, 2 * W), out.shape

    ref = jax.block_until_ready(jax.jit(ref_forward)(x, params))
    max_err = float(jnp.max(jnp.abs(out - ref)))
    # bf16 operands / f32 accumulation: compare against the f32 reference with a
    # tolerance sized for bfloat16 operand rounding.
    assert jnp.allclose(out, ref, rtol=2e-2, atol=3e-2), max_err

    print("KERNEL_OK")
</pallas_src>

<mosaic_0001>
module attributes {stable_mosaic.version = 11 : i64} {
  func.func @_conv1x1_bn_relu_kernel(%arg0: i32, %arg1: memref<8x256xbf16, #tpu.memory_space<vmem>>, %arg2: memref<8x8xbf16, #tpu.memory_space<vmem>>, %arg3: memref<8x1xf32, #tpu.memory_space<vmem>>, %arg4: memref<8x256xbf16, #tpu.memory_space<vmem>>) attributes {dimension_semantics = [#tpu.dimension_semantics<parallel>], iteration_bounds = array<i64: 2>, scalar_prefetch = 0 : i64, scratch_operands = 0 : i64, tpu.core_type = #tpu.core_type<tc>, window_params = [{transform_indices = @transform_0, window_bounds = array<i64: 8, 256>}, {pipeline_mode = #tpu.pipeline_mode<synchronous>, transform_indices = @transform_1, window_bounds = array<i64: 8, 8>}, {pipeline_mode = #tpu.pipeline_mode<synchronous>, transform_indices = @transform_2, window_bounds = array<i64: 8, 1>}, {transform_indices = @transform_3, window_bounds = array<i64: 8, 256>}]} {
    %c0 = arith.constant 0 : index
    %c0_0 = arith.constant 0 : index
    %0 = vector.load %arg2[%c0, %c0_0] : memref<8x8xbf16, #tpu.memory_space<vmem>>, vector<8x8xbf16>
    %c0_1 = arith.constant 0 : index
    %c0_2 = arith.constant 0 : index
    %1 = vector.load %arg1[%c0_1, %c0_2] : memref<8x256xbf16, #tpu.memory_space<vmem>>, vector<8x256xbf16>
    %cst = arith.constant dense<0.000000e+00> : vector<8x256xf32>
    %2 = tpu.matmul %0, %1, %cst {dimension_numbers = #tpu.dot_dimension_numbers<[1], [0], [0], [1], [0, 0, 1, 1], [], []>} : vector<8x8xbf16>, vector<8x256xbf16>, vector<8x256xf32> -> vector<8x256xf32>
    %c0_3 = arith.constant 0 : index
    %c0_4 = arith.constant 0 : index
    %3 = vector.load %arg3[%c0_3, %c0_4] : memref<8x1xf32, #tpu.memory_space<vmem>>, vector<8x1xf32>
    %4 = vector.broadcast %3 : vector<8x1xf32> to vector<8x256xf32>
    %5 = arith.addf %2, %4 : vector<8x256xf32>
    %cst_5 = arith.constant 0.000000e+00 : f32
    %6 = vector.broadcast %cst_5 : f32 to vector<8x256xf32>
    %7 = arith.maximumf %5, %6 : vector<8x256xf32>
    %8 = arith.truncf %7 : vector<8x256xf32> to vector<8x256xbf16>
    %c0_6 = arith.constant 0 : index
    %c0_7 = arith.constant 0 : index
    %9 = vector.load %arg4[%c0_6, %c0_7] : memref<8x256xbf16, #tpu.memory_space<vmem>>, vector<8x256xbf16>
    tpu.vector_store %arg4[%c0_6, %c0_7], %8 {strides = array<i32>} : memref<8x256xbf16, #tpu.memory_space<vmem>>, vector<8x256xbf16>,
    return
  }
  func.func @transform_0(%arg0: i32) -> (i32, i32) {
    %c0_i32 = arith.constant 0 : i32
    %c0_i32_0 = arith.constant 0 : i32
    return %c0_i32, %arg0 : i32, i32
  }
  func.func @transform_1(%arg0: i32) -> (i32, i32) {
    %c0_i32 = arith.constant 0 : i32
    %c0_i32_0 = arith.constant 0 : i32
    %c0_i32_1 = arith.constant 0 : i32
    return %c0_i32, %c0_i32_0 : i32, i32
  }
  func.func @transform_2(%arg0: i32) -> (i32, i32) {
    %c0_i32 = arith.constant 0 : i32
    %c0_i32_0 = arith.constant 0 : i32
    %c0_i32_1 = arith.constant 0 : i32
    return %c0_i32, %c0_i32_0 : i32, i32
  }
  func.func @transform_3(%arg0: i32) -> (i32, i32) {
    %c0_i32 = arith.constant 0 : i32
    %c0_i32_0 = arith.constant 0 : i32
    return %c0_i32, %arg0 : i32, i32
  }
}

module attributes {stable_mosaic.version = 11 : i64} {
  func.func @_fused_up_kernel(%arg0: i32, %arg1: i32, %arg2: memref<1x32x256xbf16, #tpu.memory_space<vmem>>, %arg3: memref<8x256xbf16, #tpu.memory_space<vmem>>, %arg4: memref<1x8x32xbf16, #tpu.memory_space<vmem>>, %arg5: memref<8x1xf32, #tpu.memory_space<vmem>>, %arg6: memref<16x8xbf16, #tpu.memory_space<vmem>>, %arg7: memref<1x16x8xbf16, #tpu.memory_space<vmem>>, %arg8: memref<16x1xf32, #tpu.memory_space<vmem>>, %arg9: memref<1x16x256xf32, #tpu.memory_space<vmem>>) attributes {dimension_semantics = [#tpu.dimension_semantics<parallel>, #tpu.dimension_semantics<parallel>], iteration_bounds = array<i64: 4, 2>, scalar_prefetch = 0 : i64, scratch_operands = 0 : i64, tpu.core_type = #tpu.core_type<tc>, window_params = [{transform_indices = @transform_0, window_bounds = array<i64: 1, 32, 256>}, {transform_indices = @transform_1, window_bounds = array<i64: 8, 256>}, {transform_indices = @transform_2, window_bounds = array<i64: 1, 8, 32>}, {pipeline_mode = #tpu.pipeline_mode<synchronous>, transform_indices = @transform_3, window_bounds = array<i64: 8, 1>}, {pipeline_mode = #tpu.pipeline_mode<synchronous>, transform_indices = @transform_4, window_bounds = array<i64: 16, 8>}, {transform_indices = @transform_5, window_bounds = array<i64: 1, 16, 8>}, {pipeline_mode = #tpu.pipeline_mode<synchronous>, transform_indices = @transform_6, window_bounds = array<i64: 16, 1>}, {transform_indices = @transform_7, window_bounds = array<i64: 1, 16, 256>}]} {
    %c0 = arith.constant 0 : index
    %c0_0 = arith.constant 0 : index
    %c0_1 = arith.constant 0 : index
    %0 = vector.load %arg4[%c0, %c0_0, %c0_1] : memref<1x8x32xbf16, #tpu.memory_space<vmem>>, vector<1x8x32xbf16>
    %1 = vector.shape_cast %0 : vector<1x8x32xbf16> to vector<8x32xbf16>
    %c0_2 = arith.constant 0 : index
    %c0_3 = arith.constant 0 : index
    %c0_4 = arith.constant 0 : index
    %2 = vector.load %arg2[%c0_2, %c0_3, %c0_4] : memref<1x32x256xbf16, #tpu.memory_space<vmem>>, vector<1x32x256xbf16>
    %3 = vector.shape_cast %2 : vector<1x32x256xbf16> to vector<32x256xbf16>
    %cst = arith.constant dense<0.000000e+00> : vector<8x256xf32>
    %4 = tpu.matmul %1, %3, %cst {dimension_numbers = #tpu.dot_dimension_numbers<[1], [0], [0], [1], [0, 0, 1, 1], [], []>} : vector<8x32xbf16>, vector<32x256xbf16>, vector<8x256xf32> -> vector<8x256xf32>
    %c0_5 = arith.constant 0 : index
    %c0_6 = arith.constant 0 : index
    %5 = vector.load %arg5[%c0_5, %c0_6] : memref<8x1xf32, #tpu.memory_space<vmem>>, vector<8x1xf32>
    %6 = vector.broadcast %5 : vector<8x1xf32> to vector<8x256xf32>
    %7 = arith.addf %4, %6 : vector<8x256xf32>
    %cst_7 = arith.constant 0.000000e+00 : f32
    %8 = vector.broadcast %cst_7 : f32 to vector<8x256xf32>
    %9 = arith.maximumf %7, %8 : vector<8x256xf32>
    %10 = arith.truncf %9 : vector<8x256xf32> to vector<8x256xbf16>
    %c0_8 = arith.constant 0 : index
    %c0_9 = arith.constant 0 : index
    %11 = vector.load %arg6[%c0_8, %c0_9] : memref<16x8xbf16, #tpu.memory_space<vmem>>, vector<16x8xbf16>
    %cst_10 = arith.constant dense<0.000000e+00> : vector<16x256xf32>
    %12 = tpu.matmul %11, %10, %cst_10 {dimension_numbers = #tpu.dot_dimension_numbers<[1], [0], [0], [1], [0, 0, 1, 1], [], []>} : vector<16x8xbf16>, vector<8x256xbf16>, vector<16x256xf32> -> vector<16x256xf32>
    %c0_11 = arith.constant 0 : index
    %c0_12 = arith.constant 0 : index
    %c0_13 = arith.constant 0 : index
    %13 = vector.load %arg7[%c0_11, %c0_12, %c0_13] : memref<1x16x8xbf16, #tpu.memory_space<vmem>>, vector<1x16x8xbf16>
    %14 = vector.shape_cast %13 : vector<1x16x8xbf16> to vector<16x8xbf16>
    %c0_14 = arith.constant 0 : index
    %c0_15 = arith.constant 0 : index
    %15 = vector.load %arg3[%c0_14, %c0_15] : memref<8x256xbf16, #tpu.memory_space<vmem>>, vector<8x256xbf16>
    %cst_16 = arith.constant dense<0.000000e+00> : vector<16x256xf32>
    %16 = tpu.matmul %14, %15, %cst_16 {dimension_numbers = #tpu.dot_dimension_numbers<[1], [0], [0], [1], [0, 0, 1, 1], [], []>} : vector<16x8xbf16>, vector<8x256xbf16>, vector<16x256xf32> -> vector<16x256xf32>
    %17 = arith.addf %12, %16 : vector<16x256xf32>
    %c0_17 = arith.constant 0 : index
    %c0_18 = arith.constant 0 : index
    %18 = vector.load %arg8[%c0_17, %c0_18] : memref<16x1xf32, #tpu.memory_space<vmem>>, vector<16x1xf32>
    %19 = vector.broadcast %18 : vector<16x1xf32> to vector<16x256xf32>
    %20 = arith.addf %17, %19 : vector<16x256xf32>
    %cst_19 = arith.constant 0.000000e+00 : f32
    %21 = vector.broadcast %cst_19 : f32 to vector<16x256xf32>
    %22 = arith.maximumf %20, %21 : vector<16x256xf32>
    %c0_20 = arith.constant 0 : index
    %c0_21 = arith.constant 0 : index
    %c0_22 = arith.constant 0 : index
    %23 = vector.load %arg9[%c0_20, %c0_21, %c0_22] : memref<1x16x256xf32, #tpu.memory_space<vmem>>, vector<1x16x256xf32>
    %24 = vector.shape_cast %23 : vector<1x16x256xf32> to vector<16x256xf32>
    %25 = vector.shape_cast %22 : vector<16x256xf32> to vector<1x16x256xf32>
    tpu.vector_store %arg9[%c0_20, %c0_21, %c0_22], %25 {strides = array<i32>} : memref<1x16x256xf32, #tpu.memory_space<vmem>>, vector<1x16x256xf32>,
    return
  }
  func.func @transform_0(%arg0: i32, %arg1: i32) -> (i32, i32, i32) {
    %c0_i32 = arith.constant 0 : i32
    %c0_i32_0 = arith.constant 0 : i32
    return %arg0, %c0_i32, %arg1 : i32, i32, i32
  }
  func.func @transform_1(%arg0: i32, %arg1: i32) -> (i32, i32) {
    %c0_i32 = arith.constant 0 : i32
    %c0_i32_0 = arith.constant 0 : i32
    return %c0_i32, %arg1 : i32, i32
  }
  func.func @transform_2(%arg0: i32, %arg1: i32) -> (i32, i32, i32) {
    %c0_i32 = arith.constant 0 : i32
    %c0_i32_0 = arith.constant 0 : i32
    %c0_i32_1 = arith.constant 0 : i32
    return %arg0, %c0_i32, %c0_i32_0 : i32, i32, i32
  }
  func.func @transform_3(%arg0: i32, %arg1: i32) -> (i32, i32) {
    %c0_i32 = arith.constant 0 : i32
    %c0_i32_0 = arith.constant 0 : i32
    %c0_i32_1 = arith.constant 0 : i32
    return %c0_i32, %c0_i32_0 : i32, i32
  }
  func.func @transform_4(%arg0: i32, %arg1: i32) -> (i32, i32) {
    %c0_i32 = arith.constant 0 : i32
    %c0_i32_0 = arith.constant 0 : i32
    %c0_i32_1 = arith.constant 0 : i32
    return %c0_i32, %c0_i32_0 : i32, i32
  }
  func.func @transform_5(%arg0: i32, %arg1: i32) -> (i32, i32, i32) {
    %c0_i32 = arith.constant 0 : i32
    %c0_i32_0 = arith.constant 0 : i32
    %c0_i32_1 = arith.constant 0 : i32
    return %arg0, %c0_i32, %c0_i32_0 : i32, i32, i32
  }
  func.func @transform_6(%arg0: i32, %arg1: i32) -> (i32, i32) {
    %c0_i32 = arith.constant 0 : i32
    %c0_i32_0 = arith.constant 0 : i32
    %c0_i32_1 = arith.constant 0 : i32
    return %c0_i32, %c0_i32_0 : i32, i32
  }
  func.func @transform_7(%arg0: i32, %arg1: i32) -> (i32, i32, i32) {
    %c0_i32 = arith.constant 0 : i32
    %c0_i32_0 = arith.constant 0 : i32
    return %arg0, %c0_i32, %arg1 : i32, i32, i32
  }
}

</mosaic_0001>

<bundles_post_ra>
// kernel: bottleneck_forward.2
= control target key start
LH: loop header
LB: loop body
LE: loop exit
PB: predicated region body
PF: predicated region fallthrough
CT: control target
= control target key end

     0   :  { %s337_s12 = smov 0   ;;  %s360_s0 = inlined_call_operand.vmem [shape: bf16[8,512], index: 0, kind: input, shape index: {}]   ;;  %s361_s1 = inlined_call_operand.vmem [shape: bf16[8,8], index: 1, kind: input, shape index: {}]   ;;  %s362_s2 = inlined_call_operand.vmem [shape: f32[8,1], index: 2, kind: input, shape index: {}]   ;;  %s363_s3 = inlined_call_operand.vmem [shape: bf16[8,512], index: 3, kind: output, shape index: {}]  }
   0x1 LB: > { %s285_s13 = sadd.s32 4294967295, %s314_s12   ;;  %p289_p0 = scmp.ge.s32.totalorder %s314_s12, 1  ;;  %s314_s12 = sphi %s337_s12, %s13_s12  }
   0x2   : > { %p138_p1 = scmp.lt.s32.totalorder %s314_s12, 3 }
   0x4   : > { %p139_p2 = pnand %p289_p0, %p138_p1 }
   0x5   : > { %s290_s14 = sshll.u32 (!%p139_p2), %s285_s13, 1 }
   0x6   : > { %142 = sbr.rel (%p139_p2) target bundleno = 157 (0x9d), region = 32  ;;  %p163_p3 = scmp.lt.s32.totalorder (!%p139_p2), %s290_s14, 3 }
   0xb   : > { %v316_v0 = vmov 0   ;;  %v177_v1 = vld [vmem:[%s362_s2] sm:$0xff]  ;;  %s365_s14 = smov (!%p163_p3, %s290_s14), 3  ;;  %vm192_vm0 = vcmask 1043456   ;;  %vm188_vm1 = vcmask 64512  }
   0xc   : > { %307 = vset.pattern.permute.xlu0 %v316_v0  ;;  %s291_s17 = sshll.u32 %s365_s14, 2  ;;  %v175_v9 = vld [vmem:[%s361_s1] sm:$0xf] }
   0xd   : > { %180 = vperm.xlu0 %307, %v177_v1   ;;  %s166_s20 = scalar_lea.vmem %s360_s0, %s291_s17  ;;  %s172_s25 = scalar_lea.vmem %s363_s3, %s291_s17 }
   0xe   : > { %v176_v2 = vld [vmem:[%s166_s20] sm:$0xff] }
   0xf   : > { %v184_v3 = vunpack.c.l.b16 %v176_v2  ;;  %v185_v4 = vunpack.c.h.b16 %v176_v2 }
  0x11   : > { %v186_v5 = vpack.c.b16 %v184_v3, %v184_v3  ;;  %v187_v6 = vpack.c.b16 %v185_v4, %v185_v4 }
  0x13   : > { %v194_v7 = vsel %vm192_vm0, %v186_v5, 0  ;;  %v197_v8 = vsel %vm192_vm0, %v187_v6, 0 }
  0x14   : > { %206 = vmatpush.bf16.msra.mxu0 %v194_v7  ;;  %219 = vmatpush.bf16.msra.mxu1 %v197_v8 }
  0x17   : > { %294 = vmatmul.msk.bf16.vlgmr.msra.gmra.mxu0 %vm188_vm1, %v175_v9  ;;  %295 = vmatmul.msk.bf16.vlgmr.msra.gmra.mxu1 %vm188_vm1, %v175_v9 }
  0x7f   : > { %v181_v10 = vpop.permute.xlu0 %180 }
  0x94   : > { %v208_v11 = vpop.f32.mrf.mxu0  ;;  %v221_v12 = vpop.f32.mrf.mxu1 }
  0x95   : > { %v209_v13 = vadd.f32 %v208_v11, %v181_v10  ;;  %v222_v14 = vadd.f32 %v221_v12, %v181_v10 }
  0x97   : > { %v225_v15 = vmax.f32 %v209_v13, 0.0  ;;  %v226_v16 = vmax.f32 %v222_v14, 0.0 }
  0x99   : > { %v227_v17 = vpack.c.bf16 %v226_v16, %v225_v15 }
  0x9b   : > { %228 = vst [vmem:[%s172_s25] sm:$0xff] %v227_v17 }
  0x9c   : > { %v210_v18 = vpop.f32.mrf.mxu0  ;;  %v223_v19 = vpop.f32.mrf.mxu1 }
  0x9d PF: > { %s13_s12 = sadd.s32 1, %s314_s12  }
  0x9e   : > { %p10_p4 = scmp.ge.s32.totalorder %s13_s12, 4  }
  0xa0   :  { %12 = sbr.rel (!%p10_p4) target bundleno = 1 (0x1), region = 62 }

// kernel: bottleneck_forward.3
= control target key start
LH: loop header
LB: loop body
LE: loop exit
PB: predicated region body
PF: predicated region fallthrough
CT: control target
= control target key end

     0   :  { %s946_s24 = smov 0   ;;  %s948_s25 = smov 0   ;;  %s1084_s0 = inlined_call_operand.vmem [shape: bf16[4,32,512], index: 0, kind: input, shape index: {}]   ;;  %s1085_s1 = inlined_call_operand.vmem [shape: bf16[8,512], index: 1, kind: input, shape index: {}]   ;;  %s1086_s2 = inlined_call_operand.vmem [shape: bf16[4,8,32], index: 2, kind: input, shape index: {}]   ;;  %s1087_s3 = inlined_call_operand.vmem [shape: f32[8,1], index: 3, kind: input, shape index: {}]   ;;  %s1088_s4 = inlined_call_operand.vmem [shape: bf16[16,8], index: 4, kind: input, shape index: {}]   ;;  %s1089_s5 = inlined_call_operand.vmem [shape: bf16[4,16,8], index: 5, kind: input, shape index: {}]   ;;  %s1090_s6 = inlined_call_operand.vmem [shape: f32[16,1], index: 6, kind: input, shape index: {}]   ;;  %s1091_s7 = inlined_call_operand.vmem [shape: f32[4,16,512], index: 7, kind: output, shape index: {}]  }
   0x1   :  { %s950_s26 = smov 0   ;;  %s952_s27 = smov 0  }
   0x2   :  { %s954_s28 = smov 0   ;;  %s956_s29 = smov 0  }
   0x3   :  { %s958_s30 = smov 0  }
   0x4 LB: > { %s26_s8 = sadd.s32 1, %s895_s28  ;;  %s29_s9 = sadd.s32 1, %s899_s29  ;;  %s903_s30 = sphi %s958_s30, %s17_s30   ;;  %s899_s29 = sphi %s956_s29, %s1098_s29   ;;  %s895_s28 = sphi %s954_s28, %s1097_s28   ;;  %s891_s27 = sphi %s952_s27, %s1096_s27   ;;  %s887_s26 = sphi %s950_s26, %s1095_s26   ;;  %s883_s25 = sphi %s948_s25, %s1094_s25   ;;  %s879_s24 = sphi %s946_s24, %s1093_s24  }
   0x5   : > { %p27_p0 = scmp.ge.s32.totalorder %s26_s8, 2  ;;  %s731_s10 = sadd.s32 4294967295, %s903_s30  }
   0x6   : > { %p45_p1 = scmp.ne.s32.totalorder %s883_s25, %s879_s24  ;;  %p46_p2 = scmp.eq.s32.totalorder %s903_s30, 0 }
   0x7   : > { %s1100_s8 = smov (%p27_p0, %s26_s8), 0  ;;  %s1102_s9 = smov (!%p27_p0, %s29_s9), %s899_s29 }
   0x8   : > { %p31_p3 = scmp.ge.s32.totalorder %s1102_s9, 4  ;;  %p218_p4 = scmp.eq.s32.totalorder %s731_s10, 7 }
   0x9   : > { %s34_s11 = ssub.s32 %s895_s28, %s1100_s8  ;;  %p47_p5 = por %p46_p2, %p45_p1 }
   0xa   : > { %s1104_s9 = smov (%p31_p3, %s1102_s9), 0  ;;  %p994_p6 = por %p218_p4, %p45_p1 }
   0xb   : > { %s33_s13 = ssub.s32 %s899_s29, %s1104_s9  ;;  %s38_s15 = sadd.s32 1, %s883_s25 }
   0xc   : > { %s35_s14 = sor.u32 %s34_s11, %s33_s13  ;;  %p734_p8 = scmp.ge.s32.totalorder %s903_s30, 8 }
   0xd   : > { %p36_p7 = scmp.eq.s32.totalorder %s35_s14, 0 }
   0xe   : > { %249 = sbr.rel (%p734_p8) target bundleno = 30 (0x1e), region = 28 }
   0xf   : > { %s1002_s16 = scalar_select %p36_p7, %s883_s25, %s38_s15  }
  0x13   : > { %252 = sbr.rel (!%p47_p5) target bundleno = 30 (0x1e), region = 32  ;;  %s254_s17 = sand.u32 (%p47_p5), 1, %s883_s25  }
  0x14   : > { %s736_s18 = sshll.u32 (%p47_p5), %s895_s28, 1  ;;  %s735_s19 = sshll.u32 (%p47_p5), %s254_s17, 5 }
  0x15   : > { %s737_s20 = sshll.u32 (%p47_p5), %s899_s29, 4  ;;  %s256_s13 = scalar_lea.vmem (%p47_p5), [#allocation2], %s735_s19 }
  0x16   : > { %s259_s21 = sadd.s32 (%p47_p5), %s737_s20, %s736_s18 }
  0x17   : > { %s738_s22 = sshll.u32 (%p47_p5), %s259_s21, 2 }
  0x18   : > { %s261_s11 = scalar_lea.vmem %s1084_s0, %s738_s22 }
  0x19   : > { %v296_v0 = vld [vmem:[%s261_s11] sm:$0xff]  ;;  %v298_v1 = vld [vmem:[%s261_s11 + $0x10] sm:$0xff] }
  0x1a   : > { %v300_v2 = vld [vmem:[%s261_s11 + $0x20] sm:$0xff]  ;;  %297 = vst [vmem:[%s256_s13] sm:$0xff] %v296_v0  ;;  %v302_v3 = vld [vmem:[%s261_s11 + $0x30] sm:$0xff] }
  0x1b   : > { %299 = vst [vmem:[%s256_s13 + $0x8] sm:$0xff] %v298_v1 }
  0x1c   : > { %301 = vst [vmem:[%s256_s13 + $0x10] sm:$0xff] %v300_v2 }
  0x1d   : > { %303 = vst [vmem:[%s256_s13 + $0x18] sm:$0xff] %v302_v3 }
  0x1e PF: > { %p739_p9 = scmp.ge.s32.totalorder %s903_s30, 1  ;;  %p332_p10 = scmp.lt.s32.totalorder %s903_s30, 9 }
  0x20   : > { %p333_p11 = pnand %p739_p9, %p332_p10 }
  0x21   : > { %s339_s14 = sand.u32 (!%p333_p11), 1, %s879_s24   ;;  %p390_p12 = scmp.lt.s32.totalorder (!%p333_p11), %s891_s27, 3 }
  0x22   : > { %336 = sbr.rel (%p333_p11) target bundleno = 341 (0x155), region = 82  ;;  %s1017_s18 = sshll.u32 (!%p333_p11), %s339_s14, 5 }
  0x23   : > { %s341_s19 = scalar_lea.vmem (!%p333_p11), [#allocation2], %s1017_s18  ;;  %s1031_s13 = sshll.u32 (!%p333_p11), %s887_s26, 1 }
  0x24   : > { %p385_p13 = scmp.lt.s32.totalorder (!%p333_p11), %s1031_s13, 3 }
  0x27   : > { %v406_v4 = vld [vmem:[%s1087_s3] sm:$0xff]  ;;  %v905_v5 = vmov 0   ;;  %v757_v6 = vld [vmem:[%s341_s19 + $0x10] sm:$0xf]  ;;  %v787_v7 = vld [vmem:[%s341_s19 + $0x14] sm:$0xf0] }
  0x28   : > { %847 = vset.pattern.permute.xlu0 %v905_v5  ;;  %848 = vset.pattern.permute.xlu1 %v905_v5  ;;  %v786_v8 = vld [vmem:[%s341_s19 + $0x14] sm:$0xf]  ;;  %v758_v9 = vor.u32 %v787_v7, %v757_v6  ;;  %v759_v10 = vld [vmem:[%s341_s19 + $0x18] sm:$0xf0]  ;;  %v749_v11 = vld [vmem:[%s341_s19] sm:$0xf] }
  0x29   : > { %409 = vperm.xlu0 %847, %v406_v4   ;;  %v785_v12 = vld [vmem:[%s341_s19 + $0x4] sm:$0xf0]  ;;  %v762_v13 = vor.u32 %v786_v8, %v759_v10  ;;  %v784_v14 = vld [vmem:[%s341_s19 + $0x4] sm:$0xf]  ;;  %v751_v15 = vld [vmem:[%s341_s19 + $0x8] sm:$0xf0] }
  0x2a   : > { %s391_s24 = scalar_select %p390_p12, %s891_s27, 3  ;;  %442 = vmatpush.bf16.msra.mxu0 %v758_v9  ;;  %v750_v16 = vor.u32 %v785_v12, %v749_v11  ;;  %v754_v17 = vor.u32 %v784_v14, %v751_v15  ;;  %v562_v18 = vld [vmem:[%s1090_s6] sm:$0xff]  ;;  %vm432_vm0 = vcmask 261120   ;;  %vm485_vm1 = vcmask 1043456   ;;  %v563_v28 = vld [vmem:[%s1090_s6 + $0x8] sm:$0xff] }
  0x2b   : > { %455 = vmatpush.bf16.msra.mxu1 %v762_v13  ;;  %s386_s14 = scalar_select %p385_p13, %s1031_s13, 3  ;;  %vm481_vm2 = vcmask 64512   ;;  %571 = vperm.xlu1 %848, %v563_v28   ;;  %v788_v39 = vld [vmem:[%s1088_s4] sm:$0xff] }
  0x2c   : > { %s744_s20 = sshll.u32 %s391_s24, 2  ;;  %s783_s22 = sshll.u32 %s391_s24, 3 }
  0x2d   : > { %s393_s11 = scalar_lea.vmem %s1086_s2, %s744_s20  ;;  %s743_s15 = sshll.u32 %s386_s14, 2 }
  0x2e   : > { %443 = vmatpush.bf16.msra.mxu0 %v750_v16  ;;  %v401_v19 = vld [vmem:[%s393_s11] sm:$0xf]  ;;  %s388_s21 = scalar_lea.vmem %s1085_s1, %s743_s15  ;;  %s398_s10 = scalar_lea.vmem %s1089_s5, %s783_s22 }
  0x2f   : > { %456 = vmatpush.bf16.msra.mxu1 %v754_v17  ;;  %v470_v20 = vld [vmem:[%s388_s21] sm:$0xff]  ;;  %s382_s15 = scalar_lea.vmem [#allocation3], %s1017_s18  ;;  %s779_s17 = sshll.u32 (%p994_p6), %s891_s27, 3 }
  0x30   : > { %v477_v21 = vunpack.c.l.b16 %v470_v20  ;;  %v478_v22 = vunpack.c.h.b16 %v470_v20  ;;  %v789_v27 = vld [vmem:[%s398_s10] sm:$0xff]  ;;  %s595_s18 = sadd.s32 (%p994_p6), %s779_s17, %s1031_s13 }
  0x31   : > { %566 = vperm.xlu0 %847, %v562_v18   ;;  %763 = vmatmul.msk.bf16.vlgmr.msra.gmra.mxu0 %vm432_vm0, %v401_v19  ;;  %s780_s19 = sshll.u32 (%p994_p6), %s595_s18, 3 }
  0x32   : > { %764 = vmatmul.msk.bf16.vlgmr.msra.gmra.mxu1 %vm432_vm0, %v401_v19  ;;  %v479_v23 = vpack.c.b16 %v477_v21, %v477_v21  ;;  %v480_v24 = vpack.c.b16 %v478_v22, %v478_v22  ;;  %s597_s20 = scalar_lea.vmem (%p994_p6), %s1091_s7, %s780_s19 }
  0x34   : > { %v487_v25 = vsel %vm485_vm1, %v479_v23, 0  ;;  %v490_v26 = vsel %vm485_vm1, %v480_v24, 0 }
  0x35   : > { %499 = vmatpush.bf16.msra.mxu2 %v487_v25  ;;  %513 = vmatpush.bf16.msra.mxu3 %v490_v26 }
  0x38   : > { %769 = vmatmul.msk.bf16.vlgmr.msra.gmra.mxu2 %vm481_vm2, %v789_v27  ;;  %770 = vmatmul.msk.bf16.vlgmr.msra.gmra.mxu3 %vm481_vm2, %v789_v27 }
  0x9b   : > { %v410_v29 = vpop.permute.xlu0 %409 }
  0x9d   : > { %v572_v57 = vpop.permute.xlu1 %571 }
  0xa3   : > { %v567_v50 = vpop.permute.xlu0 %566 }
  0xae   : > { %v445_v30 = vpop.f32.mrf.mxu0 }
  0xaf   : > { %v446_v31 = vadd.f32 %v445_v30, %v410_v29  ;;  %v458_v32 = vpop.f32.mrf.mxu1 }
  0xb0   : > { %v459_v33 = vadd.f32 %v458_v32, %v410_v29 }
  0xb1   : > { %v462_v34 = vmax.f32 %v446_v31, 0.0 }
  0xb2   : > { %v463_v35 = vmax.f32 %v459_v33, 0.0 }
  0xb3   : > { %v464_v36 = vpack.c.bf16 %v462_v34, %v462_v34 }
  0xb4   : > { %v465_v37 = vpack.c.bf16 %v463_v35, %v463_v35 }
  0xb5   : > { %v529_v38 = vsel %vm485_vm1, %v464_v36, 0 }
  0xb6   : > { %v447_v40 = vpop.f32.mrf.mxu0  ;;  %541 = vmatpush.bf16.msrb.mxu2 %v529_v38  ;;  %v532_v41 = vsel %vm485_vm1, %v465_v37, 0 }
  0xb7   : > { %v460_v42 = vpop.f32.mrf.mxu1  ;;  %555 = vmatpush.bf16.msrb.mxu3 %v532_v41 }
  0xb9   : > { %775 = vmatmul.msk.bf16.vlgmr.msrb.gmra.mxu2 %vm481_vm2, %v788_v39 }
  0xba   : > { %776 = vmatmul.msk.bf16.vlgmr.msrb.gmra.mxu3 %vm481_vm2, %v788_v39 }
  0xbb   : > { %v501_v43 = vpop.f32.mrf.mxu2  ;;  %v515_v44 = vpop.f32.mrf.mxu3 }
  0xc3   : > { %v503_v45 = vpop.f32.mrf.mxu2  ;;  %v517_v46 = vpop.f32.mrf.mxu3 }
 0x13c   : > { %v543_v47 = vpop.f32.mrf.mxu2 }
 0x13d   : > { %v544_v48 = vadd.f32 %v543_v47, %v501_v43  ;;  %v557_v49 = vpop.f32.mrf.mxu3 }
 0x13e   : > { %v558_v51 = vadd.f32 %v557_v49, %v515_v44 }
 0x13f   : > { %v574_v52 = vadd.f32 %v567_v50, %v544_v48 }
 0x140   : > { %v575_v53 = vadd.f32 %v567_v50, %v558_v51 }
 0x141   : > { %v578_v54 = vmax.f32 %v574_v52, 0.0 }
 0x142   : > { %v579_v55 = vmax.f32 %v575_v53, 0.0 }
 0x143   : > { %582 = vst [vmem:[%s382_s15] sm:$0xff] %v578_v54 }
 0x144   : > { %583 = vst [vmem:[%s382_s15 + $0x8] sm:$0xff] %v579_v55  ;;  %v545_v56 = vpop.f32.mrf.mxu2 }
 0x145   : > { %v546_v58 = vadd.f32 %v545_v56, %v503_v45  ;;  %v559_v59 = vpop.f32.mrf.mxu3 }
 0x146   : > { %v560_v60 = vadd.f32 %v559_v59, %v517_v46 }
 0x147   : > { %v576_v61 = vadd.f32 %v572_v57, %v546_v58 }
 0x148   : > { %v577_v62 = vadd.f32 %v572_v57, %v560_v60  ;;  %592 = sbr.rel (!%p994_p6) target bundleno = 341 (0x155), region = 90 }
 0x149   : > { %v580_v63 = vmax.f32 %v576_v61, 0.0 }
 0x14a   : > { %v581_v0 = vmax.f32 %v577_v62, 0.0  ;;  %v610_v1 = vld [vmem:[%s382_s15] sm:$0xff] (%p994_p6) }
 0x14b   : > { %584 = vst [vmem:[%s382_s15 + $0x10] sm:$0xff] %v580_v63  ;;  %v612_v2 = vld [vmem:[%s382_s15 + $0x8] sm:$0xff] (%p994_p6) }
 0x14c   : > { %585 = vst [vmem:[%s382_s15 + $0x18] sm:$0xff] %v581_v0 }
 0x14d   : > { %611 = vst [vmem:[%s597_s20] sm:$0xff] %v610_v1 }
 0x14e   : > { %613 = vst [vmem:[%s597_s20 + $0x8] sm:$0xff] %v612_v2 }
 0x152   : > { %v614_v3 = vld [vmem:[%s382_s15 + $0x10] sm:$0xff] }
 0x153   : > { %v616_v4 = vld [vmem:[%s382_s15 + $0x18] sm:$0xff]  ;;  %615 = vst [vmem:[%s597_s20 + $0x20] sm:$0xff] %v614_v3 }
 0x154   : > { %617 = vst [vmem:[%s597_s20 + $0x28] sm:$0xff] %v616_v4 }
 0x155 PF: > { %s17_s30 = sadd.s32 1, %s903_s30   ;;  %s1093_s24 = smov %s883_s25 }
 0x156   : > { %p14_p0 = scmp.ge.s32.totalorder %s17_s30, 10   ;;  %s1094_s25 = smov %s1002_s16 }
 0x157   : > { %s1095_s26 = smov %s895_s28  ;;  %s1096_s27 = smov %s899_s29 }
 0x158   : > { %s1097_s28 = smov %s1100_s8  ;;  %s1098_s29 = smov %s1104_s9 }
 0x159   :  { %16 = sbr.rel (!%p14_p0) target bundleno = 4 (0x4), region = 153 }

</bundles_post_ra>
